<compile_context>
chip_gen: v7x
topology: tpu7x:2x2x1
jax: 0.10.0
libtpu: 0.0.40
codegen_flags: <defaults>
</compile_context>

<pallas_src>
import functools
import math

import jax
import jax.numpy as jnp
from jax import lax
from jax.experimental import pallas as pl
from jax.experimental.pallas import tpu as pltpu

TEMPERATURE = 0.07
EPS = 1e-12  # F.normalize default eps


def _round_up(x, m):
    return (x + m - 1) // m * m


def _moco_kernel(q_ref, k_ref, neg_ref, out_ref,
                 qn_bf_sc, pos_sc, l_sc,
                 *, inv_t, nt, resident, pad_corr):
    ni = pl.program_id(1)

    @pl.when(ni == 0)
    def _init():
        qf = q_ref[...].astype(jnp.float32)
        kf = k_ref[...].astype(jnp.float32)
        # F.normalize(x, dim=1) == x * rsqrt(max(sum(x*x), eps^2))
        q_inv = lax.rsqrt(jnp.maximum(jnp.sum(qf * qf, axis=1, keepdims=True),
                                      jnp.float32(EPS * EPS)))
        k_inv = lax.rsqrt(jnp.maximum(jnp.sum(kf * kf, axis=1, keepdims=True),
                                      jnp.float32(EPS * EPS)))
        qn = qf * q_inv
        l_pos = jnp.sum(qn * (kf * k_inv), axis=1, keepdims=True) * inv_t
        pos_sc[...] = l_pos
        # bf16 MXU LHS with 1/T folded in; cast once per batch tile (hoisted
        # out of the queue loop).
        qn_bf_sc[...] = (qn * inv_t).astype(jnp.bfloat16)
        # Fixed-shift logsumexp: every logit <= 1/T (unit-norm operands), so
        # seed the sum-exp accumulator with the positive term at shift 1/T.
        l_sc[...] = jnp.exp(l_pos - inv_t)

    if resident:
        # Whole normalized queue lives in VMEM; slice the current tile.
        off = pl.multiple_of(ni * nt, nt)
        neg_tile = neg_ref[pl.ds(off, nt), :]
    else:
        neg_tile = neg_ref[...]

    # Negative logits for this queue tile: contract the feature dim of BOTH
    # operands (queue tile consumed in stored [Nt, D] layout, no transpose);
    # bf16 MXU inputs, f32 accumulation. Norms and 1/T are already folded into
    # the operands, so the dot result IS the logits tile.
    s = lax.dot_general(qn_bf_sc[...], neg_tile,
                        dimension_numbers=(((1,), (1,)), ((), ())),
                        preferred_element_type=jnp.float32)

    # Single fused exp+sum pass over the logits tile (no running-max pass).
    l_sc[...] += jnp.sum(jnp.exp(s - inv_t), axis=1, keepdims=True)

    @pl.when(ni == pl.num_programs(1) - 1)
    def _finalize():
        l = l_sc[...]
        if pad_corr:
            # Zero-padded queue rows each contributed exactly exp(0 - 1/T);
            # remove them with one scalar correction instead of masking every
            # (bt, nt) tile on every step.
            l = l - jnp.float32(pad_corr)
        out_ref[...] = (inv_t + jnp.log(l)) - pos_sc[...]   # per-row CE (label 0)


def moco_loss(q, k, queue, temperature=TEMPERATURE, *,
              block_b=256, block_n=4096,
              resident_queue_bytes=12 * 1024 * 1024):
    """q: [B, D], k: [B, D], queue: [N, D] -> scalar f32 loss."""
    B, D = q.shape
    N, Dn = queue.shape
    assert D == Dn, (D, Dn)
    inv_t = float(1.0 / temperature)

    # ---- queue tiling ------------------------------------------------------
    nt = min(block_n, _round_up(N, 128))
    if N > block_n and N % 128 == 0:
        # Prefer a tile (>= block_n/2) that divides N exactly so the bf16 queue
        # copy needs no zero-padding pass at all.
        for cand in range(block_n, block_n // 2 - 1, -128):
            if N % cand == 0:
                nt = cand
                break
    n_pad = _round_up(N, nt)
    pad_cols = n_pad - N

    queue_bytes = n_pad * D * 2  # bf16
    resident = queue_bytes <= resident_queue_bytes

    # ---- batch tiling --------------------------------------------------------
    bt = min(block_b, _round_up(B, 8))
    if resident and B >= 16 and _round_up(B, bt) // bt < 2:
        # Queue re-reads are free from VMEM, so keep >=2 batch tiles to feed
        # both TensorCores on v7x (harmless on single-TC v5e/v6e).
        bt = _round_up((B + 1) // 2, 8)
    b_pad = _round_up(B, bt)

    # ---- host-side prep (single pass over each input) -----------------------
    qf = q.astype(jnp.float32)
    kf = k.astype(jnp.float32)
    neg_f = queue.astype(jnp.float32)
    # Fold the per-negative inverse L2 norm straight into the bf16 queue copy:
    # the kernel applies no per-tile scale at all.
    neg_inv = lax.rsqrt(jnp.maximum(jnp.sum(neg_f * neg_f, axis=1, keepdims=True),
                                    jnp.float32(EPS * EPS)))
    neg_bf = (neg_f * neg_inv).astype(jnp.bfloat16)

    if b_pad != B:
        qf = jnp.pad(qf, ((0, b_pad - B), (0, 0)))
        kf = jnp.pad(kf, ((0, b_pad - B), (0, 0)))
    if pad_cols:
        neg_bf = jnp.pad(neg_bf, ((0, pad_cols), (0, 0)))  # zero rows -> logit 0

    grid = (b_pad // bt, n_pad // nt)

    if resident:
        # Grid-invariant block: fetched once, reused for every grid step.
        neg_spec = pl.BlockSpec((n_pad, D), lambda bi, ni: (0, 0))
    else:
        neg_spec = pl.BlockSpec((nt, D), lambda bi, ni: (ni, 0))

    kernel = functools.partial(
        _moco_kernel, inv_t=inv_t, nt=nt, resident=resident,
        pad_corr=(float(pad_cols) * math.exp(-inv_t)) if pad_cols else 0.0)

    per_row = pl.pallas_call(
        kernel,
        out_shape=jax.ShapeDtypeStruct((b_pad, 1), jnp.float32),
        grid_spec=pltpu.PrefetchScalarGridSpec(
            num_scalar_prefetch=0,
            grid=grid,
            in_specs=[
                pl.BlockSpec((bt, D), lambda bi, ni: (bi, 0)),   # q
                pl.BlockSpec((bt, D), lambda bi, ni: (bi, 0)),   # k
                neg_spec,                                        # normalized queue (bf16)
            ],
            out_specs=pl.BlockSpec((bt, 1), lambda bi, ni: (bi, 0)),
            scratch_shapes=[
                pltpu.VMEM((bt, D), jnp.bfloat16),  # (qn / T) in bf16, hoisted
                pltpu.VMEM((bt, 1), jnp.float32),   # positive logit
                pltpu.VMEM((bt, 1), jnp.float32),   # sum-exp accumulator (shift 1/T)
            ],
        ),
        compiler_params=pltpu.CompilerParams(
            dimension_semantics=("parallel", "arbitrary"),
            # 48 MiB scoped VMEM: fits the resident-queue variant while staying
            # under v7x's 64 MiB per-core VMEM (v5e/v6e have 128 MiB).
            vmem_limit_bytes=48 * 1024 * 1024,
        ),
    )(qf, kf, neg_bf)

    # Tiny final mean done in JAX (drops padded batch rows).
    return jnp.mean(per_row[:B, 0])


def _moco_loss_ref(q, k, queue, temperature=TEMPERATURE):
    # Pure-JAX (f32) reference for sanity checking.
    def l2n(x):
        n = jnp.linalg.norm(x, axis=1, keepdims=True)
        return x / jnp.maximum(n, EPS)

    qn, kn, negn = l2n(q), l2n(k), l2n(queue)
    l_pos = jnp.sum(qn * kn, axis=1, keepdims=True)
    l_neg = qn @ negn.T
    logits = jnp.concatenate([l_pos, l_neg], axis=1) / temperature
    lse = jax.scipy.special.logsumexp(logits, axis=1)
    return jnp.mean(lse - logits[:, 0])


if __name__ == "__main__":
    key = jax.random.PRNGKey(0)
    ks = jax.random.split(key, 12)
    D = 32

    def check(q, kpos, queue, **kw):
        loss = jax.block_until_ready(moco_loss(q, kpos, queue, **kw))
        ref = jax.block_until_ready(_moco_loss_ref(q, kpos, queue))
        # bf16 MXU operands -> loosened tolerance vs the pure-f32 reference.
        assert jnp.allclose(loss, ref, rtol=2e-2, atol=2e-2), (loss, ref)

    # Case 1: baseline small shapes (resident queue, single tile each axis).
    check(jax.random.normal(ks[0], (8, D), jnp.float32),
          jax.random.normal(ks[1], (8, D), jnp.float32),
          jax.random.normal(ks[2], (128, D), jnp.float32))

    # Case 2: resident queue with column padding (N=200 -> 256) and the >=2
    # batch-tile split heuristic (B=16 -> two tiles of 8).
    check(jax.random.normal(ks[3], (16, D), jnp.float32),
          jax.random.normal(ks[4], (16, D), jnp.float32),
          jax.random.normal(ks[5], (200, D), jnp.float32))

    # Case 3: streaming path (resident disabled), 4 queue tiles, batch-row and
    # queue-column padding plus the finalize-time scalar correction.
    check(jax.random.normal(ks[6], (10, D), jnp.float32),
          jax.random.normal(ks[7], (10, D), jnp.float32),
          jax.random.normal(ks[8], (400, D), jnp.float32),
          block_n=128, resident_queue_bytes=0)

    # Case 4: resident queue sliced across multiple in-kernel tiles (pl.ds with
    # dynamic offsets), N divisible by the tile so no padding is needed.
    check(jax.random.normal(ks[9], (8, D), jnp.float32),
          jax.random.normal(ks[10], (8, D), jnp.float32),
          jax.random.normal(ks[11], (384, D), jnp.float32),
          block_n=128)

    print("KERNEL_OK")
</pallas_src>

<mosaic_0001>
module attributes {stable_mosaic.version = 11 : i64} {
  func.func @_moco_kernel(%arg0: i32, %arg1: i32, %arg2: memref<8x32xf32, #tpu.memory_space<vmem>>, %arg3: memref<8x32xf32, #tpu.memory_space<vmem>>, %arg4: memref<128x32xbf16, #tpu.memory_space<vmem>>, %arg5: memref<8x1xf32, #tpu.memory_space<vmem>>, %arg6: memref<8x32xbf16, #tpu.memory_space<vmem>>, %arg7: memref<8x1xf32, #tpu.memory_space<vmem>>, %arg8: memref<8x1xf32, #tpu.memory_space<vmem>>) attributes {dimension_semantics = [#tpu.dimension_semantics<parallel>, #tpu.dimension_semantics<arbitrary>], iteration_bounds = array<i64: 1, 1>, scalar_prefetch = 0 : i64, scratch_operands = 3 : i64, tpu.core_type = #tpu.core_type<tc>, window_params = [{transform_indices = @transform_0, window_bounds = array<i64: 8, 32>}, {transform_indices = @transform_1, window_bounds = array<i64: 8, 32>}, {pipeline_mode = #tpu.pipeline_mode<synchronous>, transform_indices = @transform_2, window_bounds = array<i64: 128, 32>}, {transform_indices = @transform_3, window_bounds = array<i64: 8, 1>}]} {
    %c0_i32 = arith.constant 0 : i32
    %0 = arith.cmpi eq, %arg1, %c0_i32 : i32
    %1 = arith.extui %0 : i1 to i32
    %c0_i32_0 = arith.constant 0 : i32
    %2 = arith.cmpi ne, %1, %c0_i32_0 : i32
    scf.if %2 {
      %c0_11 = arith.constant 0 : index
      %c0_12 = arith.constant 0 : index
      %20 = vector.load %arg2[%c0_11, %c0_12] : memref<8x32xf32, #tpu.memory_space<vmem>>, vector<8x32xf32>
      %c0_13 = arith.constant 0 : index
      %c0_14 = arith.constant 0 : index
      %21 = vector.load %arg3[%c0_13, %c0_14] : memref<8x32xf32, #tpu.memory_space<vmem>>, vector<8x32xf32>
      %22 = arith.mulf %20, %20 : vector<8x32xf32>
      %cst_15 = arith.constant dense<0.000000e+00> : vector<8xf32>
      %23 = vector.multi_reduction <add>, %22, %cst_15 [1] : vector<8x32xf32> to vector<8xf32>
      %24 = vector.shape_cast %23 : vector<8xf32> to vector<8x1xf32>
      %cst_16 = arith.constant 1.000000e-24 : f32
      %25 = vector.broadcast %cst_16 : f32 to vector<8x1xf32>
      %26 = arith.maximumf %24, %25 : vector<8x1xf32>
      %27 = math.rsqrt %26 : vector<8x1xf32>
      %28 = arith.mulf %21, %21 : vector<8x32xf32>
      %cst_17 = arith.constant dense<0.000000e+00> : vector<8xf32>
      %29 = vector.multi_reduction <add>, %28, %cst_17 [1] : vector<8x32xf32> to vector<8xf32>
      %30 = vector.shape_cast %29 : vector<8xf32> to vector<8x1xf32>
      %cst_18 = arith.constant 1.000000e-24 : f32
      %31 = vector.broadcast %cst_18 : f32 to vector<8x1xf32>
      %32 = arith.maximumf %30, %31 : vector<8x1xf32>
      %33 = math.rsqrt %32 : vector<8x1xf32>
      %34 = vector.broadcast %27 : vector<8x1xf32> to vector<8x32xf32>
      %35 = arith.mulf %20, %34 : vector<8x32xf32>
      %36 = vector.broadcast %33 : vector<8x1xf32> to vector<8x32xf32>
      %37 = arith.mulf %21, %36 : vector<8x32xf32>
      %38 = arith.mulf %35, %37 : vector<8x32xf32>
      %cst_19 = arith.constant dense<0.000000e+00> : vector<8xf32>
      %39 = vector.multi_reduction <add>, %38, %cst_19 [1] : vector<8x32xf32> to vector<8xf32>
      %40 = vector.shape_cast %39 : vector<8xf32> to vector<8x1xf32>
      %cst_20 = arith.constant 14.2857141 : f32
      %41 = vector.broadcast %cst_20 : f32 to vector<8x1xf32>
      %42 = arith.mulf %40, %41 : vector<8x1xf32>
      %c0_21 = arith.constant 0 : index
      %c0_22 = arith.constant 0 : index
      %43 = vector.load %arg7[%c0_21, %c0_22] : memref<8x1xf32, #tpu.memory_space<vmem>>, vector<8x1xf32>
      tpu.vector_store %arg7[%c0_21, %c0_22], %42 {strides = array<i32>} : memref<8x1xf32, #tpu.memory_space<vmem>>, vector<8x1xf32>,
      %cst_23 = arith.constant 14.2857141 : f32
      %44 = vector.broadcast %cst_23 : f32 to vector<8x32xf32>
      %45 = arith.mulf %35, %44 : vector<8x32xf32>
      %46 = arith.truncf %45 : vector<8x32xf32> to vector<8x32xbf16>
      %c0_24 = arith.constant 0 : index
      %c0_25 = arith.constant 0 : index
      %47 = vector.load %arg6[%c0_24, %c0_25] : memref<8x32xbf16, #tpu.memory_space<vmem>>, vector<8x32xbf16>
      tpu.vector_store %arg6[%c0_24, %c0_25], %46 {strides = array<i32>} : memref<8x32xbf16, #tpu.memory_space<vmem>>, vector<8x32xbf16>,
      %cst_26 = arith.constant 14.2857141 : f32
      %48 = vector.broadcast %cst_26 : f32 to vector<8x1xf32>
      %49 = arith.subf %42, %48 : vector<8x1xf32>
      %50 = math.exp %49 : vector<8x1xf32>
      %c0_27 = arith.constant 0 : index
      %c0_28 = arith.constant 0 : index
      %51 = vector.load %arg8[%c0_27, %c0_28] : memref<8x1xf32, #tpu.memory_space<vmem>>, vector<8x1xf32>
      tpu.vector_store %arg8[%c0_27, %c0_28], %50 {strides = array<i32>} : memref<8x1xf32, #tpu.memory_space<vmem>>, vector<8x1xf32>,
    } else {
    }
    %c128_i32 = arith.constant 128 : i32
    %3 = arith.muli %arg1, %c128_i32 : i32
    %4 = tpu.assume_multiple %3, 128 : i32
    %5 = arith.index_cast %4 : i32 to index
    %c0 = arith.constant 0 : index
    %6 = vector.load %arg4[%5, %c0] : memref<128x32xbf16, #tpu.memory_space<vmem>>, vector<128x32xbf16>
    %c0_1 = arith.constant 0 : index
    %c0_2 = arith.constant 0 : index
    %7 = vector.load %arg6[%c0_1, %c0_2] : memref<8x32xbf16, #tpu.memory_space<vmem>>, vector<8x32xbf16>
    %cst = arith.constant dense<0.000000e+00> : vector<8x128xf32>
    %8 = tpu.matmul %7, %6, %cst {dimension_numbers = #tpu.dot_dimension_numbers<[1], [1], [0], [0], [0, 0, 1, 0], [], []>} : vector<8x32xbf16>, vector<128x32xbf16>, vector<8x128xf32> -> vector<8x128xf32>
    %c0_3 = arith.constant 0 : index
    %c0_4 = arith.constant 0 : index
    %9 = vector.load %arg8[%c0_3, %c0_4] : memref<8x1xf32, #tpu.memory_space<vmem>>, vector<8x1xf32>
    %cst_5 = arith.constant 14.2857141 : f32
    %10 = vector.broadcast %cst_5 : f32 to vector<8x128xf32>
    %11 = arith.subf %8, %10 : vector<8x128xf32>
    %12 = math.exp %11 : vector<8x128xf32>
    %cst_6 = arith.constant dense<0.000000e+00> : vector<8xf32>
    %13 = vector.multi_reduction <add>, %12, %cst_6 [1] : vector<8x128xf32> to vector<8xf32>
    %14 = vector.shape_cast %13 : vector<8xf32> to vector<8x1xf32>
    %15 = arith.addf %9, %14 : vector<8x1xf32>
    %c0_7 = arith.constant 0 : index
    %c0_8 = arith.constant 0 : index
    %16 = vector.load %arg8[%c0_7, %c0_8] : memref<8x1xf32, #tpu.memory_space<vmem>>, vector<8x1xf32>
    tpu.vector_store %arg8[%c0_7, %c0_8], %15 {strides = array<i32>} : memref<8x1xf32, #tpu.memory_space<vmem>>, vector<8x1xf32>,
    %c0_i32_9 = arith.constant 0 : i32
    %17 = arith.cmpi eq, %arg1, %c0_i32_9 : i32
    %18 = arith.extui %17 : i1 to i32
    %c0_i32_10 = arith.constant 0 : i32
    %19 = arith.cmpi ne, %18, %c0_i32_10 : i32
    scf.if %19 {
      %c0_11 = arith.constant 0 : index
      %c0_12 = arith.constant 0 : index
      %20 = vector.load %arg8[%c0_11, %c0_12] : memref<8x1xf32, #tpu.memory_space<vmem>>, vector<8x1xf32>
      %21 = math.log %20 : vector<8x1xf32>
      %cst_13 = arith.constant 14.2857141 : f32
      %22 = vector.broadcast %cst_13 : f32 to vector<8x1xf32>
      %23 = arith.addf %22, %21 : vector<8x1xf32>
      %c0_14 = arith.constant 0 : index
      %c0_15 = arith.constant 0 : index
      %24 = vector.load %arg7[%c0_14, %c0_15] : memref<8x1xf32, #tpu.memory_space<vmem>>, vector<8x1xf32>
      %25 = arith.subf %23, %24 : vector<8x1xf32>
      %c0_16 = arith.constant 0 : index
      %c0_17 = arith.constant 0 : index
      %26 = vector.load %arg5[%c0_16, %c0_17] : memref<8x1xf32, #tpu.memory_space<vmem>>, vector<8x1xf32>
      tpu.vector_store %arg5[%c0_16, %c0_17], %25 {strides = array<i32>} : memref<8x1xf32, #tpu.memory_space<vmem>>, vector<8x1xf32>,
    } else {
    }
    return
  }
  func.func @transform_0(%arg0: i32, %arg1: i32) -> (i32, i32) {
    %c0_i32 = arith.constant 0 : i32
    %c0_i32_0 = arith.constant 0 : i32
    return %arg0, %c0_i32 : i32, i32
  }
  func.func @transform_1(%arg0: i32, %arg1: i32) -> (i32, i32) {
    %c0_i32 = arith.constant 0 : i32
    %c0_i32_0 = arith.constant 0 : i32
    return %arg0, %c0_i32 : i32, i32
  }
  func.func @transform_2(%arg0: i32, %arg1: i32) -> (i32, i32) {
    %c0_i32 = arith.constant 0 : i32
    %c0_i32_0 = arith.constant 0 : i32
    %c0_i32_1 = arith.constant 0 : i32
    return %c0_i32, %c0_i32_0 : i32, i32
  }
  func.func @transform_3(%arg0: i32, %arg1: i32) -> (i32, i32) {
    %c0_i32 = arith.constant 0 : i32
    %c0_i32_0 = arith.constant 0 : i32
    return %arg0, %c0_i32 : i32, i32
  }
}

</mosaic_0001>

<bundles_post_ra>
// kernel: tpu_custom_call.1
= control target key start
LH: loop header
LB: loop body
LE: loop exit
PB: predicated region body
PF: predicated region fallthrough
CT: control target
= control target key end

     0   :  { %vm22_vm0 = vcmask 261120   ;;  %v266_v2 = vmov 0.0   ;;  %vm267_vm1 = vmmov 0   ;;  %vm45_vm2 = vcmask 257024   ;;  %s337_s0 = inlined_call_operand.vmem [shape: f32[8,32], index: 0, kind: input, shape index: {}]   ;;  %s338_s1 = inlined_call_operand.vmem [shape: f32[8,32], index: 1, kind: input, shape index: {}]   ;;  %s339_s2 = inlined_call_operand.vmem [shape: bf16[128,32], index: 2, kind: input, shape index: {}]   ;;  %s340_s3 = inlined_call_operand.vmem [shape: f32[8,1], index: 3, kind: output, shape index: {}]  }
   0x1   :  { %v19_v0 = vld [vmem:[%s337_s0] sm:$0xff]  ;;  %226 = vmatprep.subr.bf16.mxu0 %v266_v2  ;;  %v249_v9 = vld [vmem:[%s339_s2 + $0x8] sm:$0xff]   ;;  %v250_v11 = vld [vmem:[%s339_s2 + $0x10] sm:$0xff]   ;;  %242 = vmatprep.mubr.msk.bf16.mxu0 %vm267_vm1, %v266_v2  ;;  %vm41_vm3 = vcmask 7168  }
   0x2   :  { %v20_v1 = vld [vmem:[%s338_s1] sm:$0xff]  ;;  %v21_v3 = vmul.f32 %v19_v0, %v19_v0  ;;  %v121_v10 = vsel %vm22_vm0, %v249_v9, 0  ;;  %v124_v12 = vsel %vm22_vm0, %v250_v11, 0  ;;  %v251_v13 = vld [vmem:[%s339_s2 + $0x18] sm:$0xff]   ;;  %v253_v17 = vld [vmem:[%s339_s2 + $0x28] sm:$0xff]  }
   0x3   :  { %v28_v4 = vmul.f32 %v20_v1, %v20_v1  ;;  %v248_v5 = vld [vmem:[%s339_s2] sm:$0xff]   ;;  %v127_v14 = vsel %vm22_vm0, %v251_v13, 0  ;;  %v133_v18 = vsel %vm22_vm0, %v253_v17, 0  ;;  %v254_v19 = vld [vmem:[%s339_s2 + $0x30] sm:$0xff]   ;;  %v255_v21 = vld [vmem:[%s339_s2 + $0x38] sm:$0xff]  }
   0x4   :  { %v23_v6 = vsel %vm22_vm0, %v21_v3, 0.0  ;;  %v118_v7 = vsel %vm22_vm0, %v248_v5, 0  ;;  %v252_v15 = vld [vmem:[%s339_s2 + $0x20] sm:$0xff]   ;;  %v136_v20 = vsel %vm22_vm0, %v254_v19, 0  ;;  %v139_v22 = vsel %vm22_vm0, %v255_v21, 0 }
   0x5   :  { %24 = vadd.xlane.f32.xlu0 %v23_v6  ;;  %227 = vmatpush3.bf16.xpose.msra.mxu0 %v118_v7  ;;  %v29_v8 = vsel %vm22_vm0, %v28_v4, 0.0  ;;  %v130_v16 = vsel %vm22_vm0, %v252_v15, 0 }
   0x6   :  { %228 = vmatprep.subr.bf16.mxu0 %v266_v2 }
   0x9   :  { %30 = vadd.xlane.f32.xlu0 %v29_v8 }
   0xd   :  { %229 = vmatpush3.bf16.xpose.msra.mxu0 %v121_v10 }
   0xe   :  { %230 = vmatprep.subr.bf16.mxu0 %v266_v2 }
  0x15   :  { %231 = vmatpush3.bf16.xpose.msra.mxu0 %v124_v12 }
  0x16   :  { %232 = vmatprep.subr.bf16.mxu0 %v266_v2 }
  0x1d   :  { %233 = vmatpush3.bf16.xpose.msra.mxu0 %v127_v14 }
  0x1e   :  { %234 = vmatprep.subr.bf16.mxu0 %v266_v2 }
  0x25   :  { %235 = vmatpush3.bf16.xpose.msra.mxu0 %v130_v16 }
  0x26   :  { %236 = vmatprep.subr.bf16.mxu0 %v266_v2 }
  0x2d   :  { %237 = vmatpush3.bf16.xpose.msra.mxu0 %v133_v18 }
  0x2e   :  { %238 = vmatprep.subr.bf16.mxu0 %v266_v2 }
  0x35   :  { %239 = vmatpush3.bf16.xpose.msra.mxu0 %v136_v20 }
  0x36   :  { %240 = vmatprep.subr.bf16.mxu0 %v266_v2 }
  0x3d   :  { %241 = vmatpush3.bf16.xpose.msra.mxu0 %v139_v22 }
  0x92   :  { %v25_v23 = vpop.xlane.xlu0 %24 }
  0x93   :  { %v26_v24 = vmax.f32 %v25_v23, 1e-24 }
  0x95   :  { %256 = vrsqrt.f32 %v26_v24 }
  0x96   :  { %v31_v25 = vpop.xlane.xlu0 %30 }
  0x97   :  { %v32_v26 = vmax.f32 %v31_v25, 1e-24 }
  0x99   :  { %258 = vrsqrt.f32 %v32_v26 }
  0x9f   :  { %v257_v27 = vpop.eup %256 }
  0xa0   :  { %v34_v28 = vmul.f32 %v257_v27, %v19_v0 }
  0xa2   :  { %v43_v29 = vmul.f32 14.285714, %v34_v28 }
  0xa3   :  { %v259_v30 = vpop.eup %258 }
  0xa4   :  { %v35_v31 = vmul.f32 %v259_v30, %v20_v1  ;;  %v44_v32 = vpack.c.bf16 %v43_v29, %v43_v29 }
  0xa6   :  { %v36_v33 = vmul.f32 %v35_v31, %v34_v28  ;;  %46 = vst.msk [vmem:[#allocation2] sm:$0xf] %vm45_vm2, %v44_v32 }
  0xa8   :  { %v37_v34 = vsel %vm22_vm0, %v36_v33, 0.0 }
  0xa9   :  { %38 = vadd.xlane.f32.xlu1 %v37_v34 }
  0xad   :  { %v72_v35 = vld [vmem:[#allocation2] sm:$0xf] }
  0xae   :  { %243 = vmatmul.mubr.msk.bf16.vlgmr.msra.gmra.mrb[0].mxu0 %vm22_vm0, %v72_v35 }
 0x136   :  { %v39_v36 = vpop.xlane.xlu1 %38 }
 0x137   :  { %v40_v37 = vmul.f32 14.285714, %v39_v36 }
 0x139   :  { %42 = vst.msk [vmem:[#allocation3] sm:$0xff] %vm41_vm3, %v40_v37  ;;  %v206_v38 = vadd.f32 -14.285714, %v40_v37 }
 0x13b   :  { %v48_v39 = vmul.f32 1.442695, %v206_v38 }
 0x13d   :  { %260 = vpow2.f32 %v48_v39 }
 0x140   :  { %v197_v55 = vld [vmem:[#allocation3] sm:$0xff] }
 0x147   :  { %v261_v40 = vpop.eup %260 }
 0x148   :  { %50 = vst.msk [vmem:[#allocation4] sm:$0xff] %vm41_vm3, %v261_v40 }
 0x14f   :  { %v181_v48 = vld [vmem:[#allocation4] sm:$0xff] }
 0x181   :  { %v175_v41 = vpop.f32.mrb[0].mxu0 }
 0x182   :  { %v216_v42 = vadd.f32 -14.285714, %v175_v41  ;;  %v244_v43 = vpop.f32.mrb[1].mxu0 }
 0x183   :  { %v178_v44 = vpop.f32.mrb[2].mxu0 }
 0x184   :  { %v183_v45 = vmul.f32 1.442695, %v216_v42  ;;  %v245_v46 = vpop.f32.mrb[3].mxu0 }
 0x186   :  { %262 = vpow2.f32 %v183_v45 }
 0x190   :  { %v263_v47 = vpop.eup %262 }
 0x191   :  { %185 = vadd.xlane.f32.xlu1 %v263_v47 }
 0x21e   :  { %v186_v49 = vpop.xlane.xlu1 %185 }
 0x21f   :  { %v187_v50 = vadd.f32 %v186_v49, %v181_v48 }
 0x221   :  { %189 = vst.msk [vmem:[#allocation4] sm:$0xff] %vm41_vm3, %v187_v50 }
 0x228   :  { %v193_v51 = vld [vmem:[#allocation4] sm:$0xff] }
 0x229   :  { %264 = vlog2.f32 %v193_v51 }
 0x233   :  { %v265_v52 = vpop.eup %264 }
 0x234   :  { %v195_v53 = vmul.f32 0.6931472, %v265_v52 }
 0x236   :  { %v196_v54 = vadd.f32 14.285714, %v195_v53 }
 0x238   :  { %v198_v56 = vsub.f32 %v196_v54, %v197_v55 }
 0x23a   :  { %199 = vst.msk [vmem:[%s340_s3] sm:$0xff] %vm41_vm3, %v198_v56 }

</bundles_post_ra>
